<compile_context>
chip_gen: v7x
topology: tpu7x:2x2x1
jax: 0.10.0
libtpu: 0.0.40
codegen_flags: <defaults>
</compile_context>

<pallas_src>
import jax
import jax.numpy as jnp
from jax.experimental import pallas as pl
from jax.experimental.pallas import tpu as pltpu


def _transition_kernel(scale_ref, bias_ref, w_ref, x_ref, o_ref):
    # scale/bias: (1, Cin) f32   (scale = gamma*rsqrt(var+eps), bias = beta - mean*scale)
    # w_ref:      (Cin, Cout_pad) bf16, 0.25 pool factor folded in, Cout zero-padded to 128n
    # x_ref:      (4, TM, Cin) bf16  -- the 4 positions of the 2x2 pooling window
    # o_ref:      (TM, Cout_pad) bf16 (lane-dense store)
    scale = scale_ref[...]
    bias = bias_ref[...]

    # BN affine + ReLU in f32 on the VPU (hidden under the HBM stream on v5e/v6e),
    # window-sum BEFORE the 1x1 conv: both linear -> exact, matmul LHS shrinks 4x.
    # TODO(synk): on v7x the VPU can become co-critical with the 3.2 TB/s HBM stream;
    # a bf16 affine/relu/sum path would halve VALU-slot pressure there.
    acc = jnp.maximum(x_ref[0].astype(jnp.float32) * scale + bias, 0.0)
    for p in range(1, 4):
        acc = acc + jnp.maximum(x_ref[p].astype(jnp.float32) * scale + bias, 0.0)

    # Single bf16 x bf16 -> f32 MXU matmul per tile; lane-dense (TM, Cout_pad) store.
    o_ref[...] = jnp.dot(acc.astype(jnp.bfloat16), w_ref[...],
                         preferred_element_type=jnp.float32).astype(o_ref.dtype)


def transition_forward(x_nchw, gamma, beta, conv_w, eps=1e-5, tm=None):
    """Pallas implementation of Transition.forward. x_nchw: (N, Cin, H, W) float32."""
    N, Cin, H, W = x_nchw.shape
    assert H % 2 == 0 and W % 2 == 0, "avg_pool2d(2) path assumes even spatial dims"
    Cout = conv_w.shape[0]
    Ho, Wo = H // 2, W // 2
    M = N * Ho * Wo

    x_f32 = x_nchw.astype(jnp.float32)

    # BN batch statistics (training mode) in f32 via XLA reductions; they fuse with
    # the transpose's read of x, and jnp.var is two-pass (numerically robust).
    mean = jnp.mean(x_f32, axis=(0, 2, 3))
    var = jnp.var(x_f32, axis=(0, 2, 3))           # biased, matches BN normalization
    inv = jax.lax.rsqrt(var + jnp.float32(eps))
    g = gamma.astype(jnp.float32)
    scale = (g * inv).reshape(1, Cin)
    bias = (beta.astype(jnp.float32) - mean * g * inv).reshape(1, Cin)

    # Channels-last + 2x2-window split, written as bf16 so the dominant Pallas read
    # (and the transpose's write) move half the bytes:
    #   (N,Cin,Ho,2,Wo,2) -> (2,2,N,Ho,Wo,Cin) -> (4, M, Cin) bf16.
    x6 = x_f32.astype(jnp.bfloat16).reshape(N, Cin, Ho, 2, Wo, 2)
    xr = jnp.transpose(x6, (3, 5, 0, 2, 4, 1)).reshape(4, M, Cin)

    # 1x1 conv weight: (Cout,Cin) -> (Cin,Cout), fold exact 0.25 pool factor, zero-pad
    # Cout to a lane-dense multiple of 128, cast to bf16 (f32 MXU accumulation kept).
    cout_pad = -(-Cout // 128) * 128
    w_t = conv_w.reshape(Cout, Cin).astype(jnp.float32).T * jnp.float32(0.25)
    if cout_pad != Cout:
        w_t = jnp.pad(w_t, ((0, 0), (0, cout_pad - Cout)))
    w_t = w_t.astype(jnp.bfloat16)

    # Generation-gated tile size over M: bigger blocks amortize the ~0.35us/step grid
    # overhead on v5e/v6e (128 MiB VMEM); stay conservative on v7x (64 MiB VMEM).
    try:
        vmem_cap = int(pltpu.get_tpu_info().vmem_capacity_bytes)
    except Exception:  # non-TPU trace / API drift -> conservative default
        vmem_cap = 64 * 1024 * 1024
    block_budget = (8 if vmem_cap >= 100 * 1024 * 1024 else 3) * 1024 * 1024
    if tm is None:
        tm = block_budget // (4 * Cin * 2 + cout_pad * 2)   # bf16 input + output rows
    tm = max(16, (min(int(tm), -(-M // 16) * 16) // 16) * 16)  # bf16 sublane packing
    num_tiles = -(-M // tm)
    m_pad = num_tiles * tm
    if m_pad != M:
        # Zero rows contribute relu(bias) to the matmul but are sliced off below.
        xr = jnp.pad(xr, ((0, 0), (0, m_pad - M), (0, 0)))

    x_spec = pl.BlockSpec((4, tm, Cin), lambda i: (0, i, 0))
    ch_spec = pl.BlockSpec((1, Cin), lambda i: (0, 0))        # grid-resident
    w_spec = pl.BlockSpec((Cin, cout_pad), lambda i: (0, 0))  # grid-resident
    out_spec = pl.BlockSpec((tm, cout_pad), lambda i: (i, 0))

    work_bytes = (2 * 4 * tm * Cin * 2        # double-buffered bf16 input blocks
                  + 2 * tm * cout_pad * 2     # double-buffered bf16 output blocks
                  + 2 * Cin * cout_pad * 2    # resident weight
                  + 4 * Cin * 4)              # resident scale / bias
    vmem_limit = int(max(32 * 1024 * 1024,
                         min(work_bytes + 8 * 1024 * 1024, (3 * vmem_cap) // 4)))

    cost = pl.CostEstimate(
        flops=2 * m_pad * Cin * cout_pad,
        transcendentals=0,
        bytes_accessed=(4 * m_pad * Cin * 2 + Cin * cout_pad * 2
                        + m_pad * cout_pad * 2 + 2 * Cin * 4),
    )

    out = pl.pallas_call(
        _transition_kernel,
        out_shape=jax.ShapeDtypeStruct((m_pad, cout_pad), jnp.bfloat16),
        grid=(num_tiles,),
        in_specs=[ch_spec, ch_spec, w_spec, x_spec],
        out_specs=out_spec,
        compiler_params=pltpu.CompilerParams(
            dimension_semantics=("parallel",),
            vmem_limit_bytes=vmem_limit),
        cost_estimate=cost,
    )(scale, bias, w_t, xr)

    out = out[:M, :Cout].astype(jnp.float32).reshape(N, Ho, Wo, Cout)
    return jnp.transpose(out, (0, 3, 1, 2))                  # NHWC -> NCHW


def transition_reference(x, gamma, beta, conv_w, eps=1e-5):
    """Pure-JAX f32 reference mirroring PyTorch training-mode forward (NCHW)."""
    N, Cin, H, W = x.shape
    Cout = conv_w.shape[0]
    mean = x.mean(axis=(0, 2, 3), keepdims=True)
    var = x.var(axis=(0, 2, 3), keepdims=True)        # biased, matches BN normalization
    xn = (x - mean) / jnp.sqrt(var + eps)
    xn = xn * gamma.reshape(1, Cin, 1, 1) + beta.reshape(1, Cin, 1, 1)
    xn = jnp.maximum(xn, 0.0)
    y = jnp.einsum("nchw,oc->nohw", xn, conv_w.reshape(Cout, Cin))
    y = y.reshape(N, Cout, H // 2, 2, W // 2, 2).mean(axis=(3, 5))
    return y


if __name__ == "__main__":
    key = jax.random.PRNGKey(0)
    k_x, k_g, k_b, k_w = jax.random.split(key, 4)

    N, Cin, H, W = 2, 128, 16, 16
    Cout = 64

    x = jax.random.normal(k_x, (N, Cin, H, W), dtype=jnp.float32)
    gamma = 1.0 + 0.1 * jax.random.normal(k_g, (Cin,), dtype=jnp.float32)
    beta = 0.1 * jax.random.normal(k_b, (Cin,), dtype=jnp.float32)
    # Conv2d(Cin, Cout, kernel_size=1, bias=False) weight: (Cout, Cin, 1, 1)
    conv_w = jax.random.normal(k_w, (Cout, Cin, 1, 1), dtype=jnp.float32) / jnp.sqrt(Cin)

    ref = transition_reference(x, gamma, beta, conv_w)

    # Default tiling (single tile at this size).
    out = jax.block_until_ready(transition_forward(x, gamma, beta, conv_w))
    assert out.shape == (N, Cout, H // 2, W // 2), out.shape
    err = float(jnp.max(jnp.abs(out - ref)))
    assert jnp.allclose(out, ref, rtol=5e-2, atol=5e-2), err  # bf16 operands/output

    # Forced small tile: exercises the multi-tile grid and the M-padding path
    # (M=128, tm=48 -> 3 tiles, padded to 144).
    out2 = jax.block_until_ready(transition_forward(x, gamma, beta, conv_w, tm=48))
    err2 = float(jnp.max(jnp.abs(out2 - ref)))
    assert jnp.allclose(out2, ref, rtol=5e-2, atol=5e-2), err2

    print("KERNEL_OK")
</pallas_src>

<mosaic_0001>
module attributes {stable_mosaic.version = 11 : i64} {
  func.func @_transition_kernel(%arg0: i32, %arg1: memref<1x128xf32, #tpu.memory_space<vmem>>, %arg2: memref<1x128xf32, #tpu.memory_space<vmem>>, %arg3: memref<128x128xbf16, #tpu.memory_space<vmem>>, %arg4: memref<4x128x128xbf16, #tpu.memory_space<vmem>>, %arg5: memref<128x128xbf16, #tpu.memory_space<vmem>>) attributes {dimension_semantics = [#tpu.dimension_semantics<parallel>], iteration_bounds = array<i64: 1>, scalar_prefetch = 0 : i64, scratch_operands = 0 : i64, tpu.core_type = #tpu.core_type<tc>, window_params = [{pipeline_mode = #tpu.pipeline_mode<synchronous>, transform_indices = @transform_0, window_bounds = array<i64: 1, 128>}, {pipeline_mode = #tpu.pipeline_mode<synchronous>, transform_indices = @transform_1, window_bounds = array<i64: 1, 128>}, {pipeline_mode = #tpu.pipeline_mode<synchronous>, transform_indices = @transform_2, window_bounds = array<i64: 128, 128>}, {transform_indices = @transform_3, window_bounds = array<i64: 4, 128, 128>}, {transform_indices = @transform_4, window_bounds = array<i64: 128, 128>}]} {
    %c0 = arith.constant 0 : index
    %c0_0 = arith.constant 0 : index
    %0 = vector.load %arg1[%c0, %c0_0] : memref<1x128xf32, #tpu.memory_space<vmem>>, vector<1x128xf32>
    %c0_1 = arith.constant 0 : index
    %c0_2 = arith.constant 0 : index
    %1 = vector.load %arg2[%c0_1, %c0_2] : memref<1x128xf32, #tpu.memory_space<vmem>>, vector<1x128xf32>
    %c0_3 = arith.constant 0 : index
    %c0_4 = arith.constant 0 : index
    %c0_5 = arith.constant 0 : index
    %2 = vector.load %arg4[%c0_3, %c0_4, %c0_5] : memref<4x128x128xbf16, #tpu.memory_space<vmem>>, vector<1x128x128xbf16>
    %3 = vector.shape_cast %2 : vector<1x128x128xbf16> to vector<128x128xbf16>
    %4 = arith.extf %3 : vector<128x128xbf16> to vector<128x128xf32>
    %5 = vector.broadcast %0 : vector<1x128xf32> to vector<128x128xf32>
    %6 = arith.mulf %4, %5 : vector<128x128xf32>
    %7 = vector.broadcast %1 : vector<1x128xf32> to vector<128x128xf32>
    %8 = arith.addf %6, %7 : vector<128x128xf32>
    %cst = arith.constant 0.000000e+00 : f32
    %9 = vector.broadcast %cst : f32 to vector<128x128xf32>
    %10 = arith.maximumf %8, %9 : vector<128x128xf32>
    %c1 = arith.constant 1 : index
    %c0_6 = arith.constant 0 : index
    %c0_7 = arith.constant 0 : index
    %11 = vector.load %arg4[%c1, %c0_6, %c0_7] : memref<4x128x128xbf16, #tpu.memory_space<vmem>>, vector<1x128x128xbf16>
    %12 = vector.shape_cast %11 : vector<1x128x128xbf16> to vector<128x128xbf16>
    %13 = arith.extf %12 : vector<128x128xbf16> to vector<128x128xf32>
    %14 = vector.broadcast %0 : vector<1x128xf32> to vector<128x128xf32>
    %15 = arith.mulf %13, %14 : vector<128x128xf32>
    %16 = vector.broadcast %1 : vector<1x128xf32> to vector<128x128xf32>
    %17 = arith.addf %15, %16 : vector<128x128xf32>
    %cst_8 = arith.constant 0.000000e+00 : f32
    %18 = vector.broadcast %cst_8 : f32 to vector<128x128xf32>
    %19 = arith.maximumf %17, %18 : vector<128x128xf32>
    %20 = arith.addf %10, %19 : vector<128x128xf32>
    %c2 = arith.constant 2 : index
    %c0_9 = arith.constant 0 : index
    %c0_10 = arith.constant 0 : index
    %21 = vector.load %arg4[%c2, %c0_9, %c0_10] : memref<4x128x128xbf16, #tpu.memory_space<vmem>>, vector<1x128x128xbf16>
    %22 = vector.shape_cast %21 : vector<1x128x128xbf16> to vector<128x128xbf16>
    %23 = arith.extf %22 : vector<128x128xbf16> to vector<128x128xf32>
    %24 = vector.broadcast %0 : vector<1x128xf32> to vector<128x128xf32>
    %25 = arith.mulf %23, %24 : vector<128x128xf32>
    %26 = vector.broadcast %1 : vector<1x128xf32> to vector<128x128xf32>
    %27 = arith.addf %25, %26 : vector<128x128xf32>
    %cst_11 = arith.constant 0.000000e+00 : f32
    %28 = vector.broadcast %cst_11 : f32 to vector<128x128xf32>
    %29 = arith.maximumf %27, %28 : vector<128x128xf32>
    %30 = arith.addf %20, %29 : vector<128x128xf32>
    %c3 = arith.constant 3 : index
    %c0_12 = arith.constant 0 : index
    %c0_13 = arith.constant 0 : index
    %31 = vector.load %arg4[%c3, %c0_12, %c0_13] : memref<4x128x128xbf16, #tpu.memory_space<vmem>>, vector<1x128x128xbf16>
    %32 = vector.shape_cast %31 : vector<1x128x128xbf16> to vector<128x128xbf16>
    %33 = arith.extf %32 : vector<128x128xbf16> to vector<128x128xf32>
    %34 = vector.broadcast %0 : vector<1x128xf32> to vector<128x128xf32>
    %35 = arith.mulf %33, %34 : vector<128x128xf32>
    %36 = vector.broadcast %1 : vector<1x128xf32> to vector<128x128xf32>
    %37 = arith.addf %35, %36 : vector<128x128xf32>
    %cst_14 = arith.constant 0.000000e+00 : f32
    %38 = vector.broadcast %cst_14 : f32 to vector<128x128xf32>
    %39 = arith.maximumf %37, %38 : vector<128x128xf32>
    %40 = arith.addf %30, %39 : vector<128x128xf32>
    %41 = arith.truncf %40 : vector<128x128xf32> to vector<128x128xbf16>
    %c0_15 = arith.constant 0 : index
    %c0_16 = arith.constant 0 : index
    %42 = vector.load %arg3[%c0_15, %c0_16] : memref<128x128xbf16, #tpu.memory_space<vmem>>, vector<128x128xbf16>
    %cst_17 = arith.constant dense<0.000000e+00> : vector<128x128xf32>
    %43 = tpu.matmul %41, %42, %cst_17 {dimension_numbers = #tpu.dot_dimension_numbers<[1], [0], [0], [1], [0, 0, 1, 1], [], []>} : vector<128x128xbf16>, vector<128x128xbf16>, vector<128x128xf32> -> vector<128x128xf32>
    %44 = arith.truncf %43 : vector<128x128xf32> to vector<128x128xbf16>
    %c0_18 = arith.constant 0 : index
    %c0_19 = arith.constant 0 : index
    %45 = vector.load %arg5[%c0_18, %c0_19] : memref<128x128xbf16, #tpu.memory_space<vmem>>, vector<128x128xbf16>
    tpu.vector_store %arg5[%c0_18, %c0_19], %44 {strides = array<i32>} : memref<128x128xbf16, #tpu.memory_space<vmem>>, vector<128x128xbf16>,
    return
  }
  func.func @transform_0(%arg0: i32) -> (i32, i32) {
    %c0_i32 = arith.constant 0 : i32
    %c0_i32_0 = arith.constant 0 : i32
    %c0_i32_1 = arith.constant 0 : i32
    return %c0_i32, %c0_i32_0 : i32, i32
  }
  func.func @transform_1(%arg0: i32) -> (i32, i32) {
    %c0_i32 = arith.constant 0 : i32
    %c0_i32_0 = arith.constant 0 : i32
    %c0_i32_1 = arith.constant 0 : i32
    return %c0_i32, %c0_i32_0 : i32, i32
  }
  func.func @transform_2(%arg0: i32) -> (i32, i32) {
    %c0_i32 = arith.constant 0 : i32
    %c0_i32_0 = arith.constant 0 : i32
    %c0_i32_1 = arith.constant 0 : i32
    return %c0_i32, %c0_i32_0 : i32, i32
  }
  func.func @transform_3(%arg0: i32) -> (i32, i32, i32) {
    %c0_i32 = arith.constant 0 : i32
    %c0_i32_0 = arith.constant 0 : i32
    %c0_i32_1 = arith.constant 0 : i32
    return %c0_i32, %arg0, %c0_i32_0 : i32, i32, i32
  }
  func.func @transform_4(%arg0: i32) -> (i32, i32) {
    %c0_i32 = arith.constant 0 : i32
    %c0_i32_0 = arith.constant 0 : i32
    return %arg0, %c0_i32 : i32, i32
  }
}

</mosaic_0001>

<bundles_post_ra>
// kernel: tpu_custom_call.1
= control target key start
LH: loop header
LB: loop body
LE: loop exit
PB: predicated region body
PF: predicated region fallthrough
CT: control target
= control target key end

     0   :  { %9 = vsyncpa [#allocation3], 0  ;;  %s1350_s0 = inlined_call_operand.hbm [shape: f32[1,128], index: 0, kind: input, shape index: {}]   ;;  %s1351_s1 = inlined_call_operand.vmem [shape: f32[1,128], index: 1, kind: input, shape index: {}]   ;;  %s1352_s2 = inlined_call_operand.hbm [shape: bf16[128,128], index: 2, kind: input, shape index: {}]   ;;  %s1353_s3 = inlined_call_operand.hbm [shape: bf16[4,128,128], index: 3, kind: input, shape index: {}]   ;;  %s1354_s4 = inlined_call_operand.hbm [shape: bf16[128,128], index: 4, kind: output, shape index: {}]  }
   0x1   :  { %10 = vsyncpa [#allocation6], 0 }
   0x2   :  { %11 = vsyncpa [#allocation4], 0  ;;  %s1127_s15 = smov [#allocation5]   ;;  %s1033_s19 = scalar_lea.hbm %s1352_s2, 1024 }
   0x3   :  { %s29_s16 = sshll.u32 %s1127_s15, 4  ;;  %p1034_p0 = scmp.ne.s32.totalorder %s1352_s2, %s1033_s19  ;;  %s30_s16 = int_to_ptr.vmem [resolvable:$true] %s29_s16 }
   0x4   :  { %p1037_p1 = scmp.lt.u32.totalorder %s1033_s19, %s1352_s2 }
   0x6   :  { %p1039_p2 = pnand %p1037_p1, %p1034_p0 }
   0x8   :  { %1042 = shalt.err (!%p1039_p2)
}
   0x9   :  { %s1043_s24 = scalar_lea.vmem %s30_s16, 1024  ;;  %p1048_p4 = scmp.lt.s32.totalorder %s30_s16, %s30_s16 }
   0xa   :  { %p1044_p3 = scmp.ne.s32.totalorder %s30_s16, %s1043_s24  ;;  %p1049_p5 = scmp.lt.s32.totalorder %s1043_s24, %s1043_s24 }
   0xc   :  { %p1050_p6 = por %p1049_p5, %p1048_p4 }
   0xe   :  { %p1051_p7 = pnand %p1050_p6, %p1044_p3 }
  0x10   :  { %1054 = shalt.err (!%p1051_p7)
}
  0x11   :  { %s1128_s25 = smov 64   ;;  %s1129_s26 = smov 4  }
  0x12   :  { %35 = dma.hbm_to_vmem [thread:$0]  %s1352_s2, 1024, %s30_s16, [#allocation6], %s1128_s25, %s1128_s25, %s1129_s26  }
  0x13   :  { %s1130_s29 = smov [#allocation2]   ;;  %s1131_s5 = smov [#allocation7]  }
  0x14   :  { %s18_s30 = sshll.u32 %s1130_s29, 4  ;;  %s41_s6 = sshll.u32 %s1131_s5, 4  ;;  %s19_s30 = int_to_ptr.vmem [resolvable:$true] %s18_s30  ;;  %s42_s6 = int_to_ptr.vmem [resolvable:$true] %s41_s6 }
  0x15   :  { %s1055_s9 = scalar_lea.hbm %s1350_s0, 16 }
  0x16   :  { %p1056_p8 = scmp.ne.s32.totalorder %s1350_s0, %s1055_s9  ;;  %p1059_p9 = scmp.lt.u32.totalorder %s1055_s9, %s1350_s0 }
  0x18   :  { %p1061_p10 = pnand %p1059_p9, %p1056_p8 }
  0x1a   :  { %1064 = shalt.err (!%p1061_p10)
}
  0x1b   :  { %s1065_s2 = scalar_lea.vmem %s19_s30, 16  ;;  %s1069_s14 = scalar_lea.vmem %s19_s30, 32 }
  0x1c   :  { %p1066_p11 = scmp.ne.s32.totalorder %s19_s30, %s1065_s2  ;;  %p1070_p12 = scmp.lt.s32.totalorder %s19_s30, %s19_s30 }
  0x1d   :  { %p1071_p13 = scmp.lt.s32.totalorder %s1069_s14, %s1065_s2 }
  0x1f   :  { %p1072_p0 = por %p1071_p13, %p1070_p12 }
  0x21   :  { %p1073_p1 = pnand %p1072_p0, %p1066_p11 }
  0x23   :  { %1076 = shalt.err (!%p1073_p1)
}
  0x24   :  { %21 = dma.hbm_to_vmem [thread:$0]  %s1350_s0, 16, %s19_s30, [#allocation3]  }
  0x25   :  { %s1077_s19 = scalar_lea.hbm %s1353_s3, 4096 }
  0x26   :  { %p1078_p2 = scmp.ne.s32.totalorder %s1353_s3, %s1077_s19  ;;  %p1081_p3 = scmp.lt.u32.totalorder %s1077_s19, %s1353_s3 }
  0x28   :  { %p1083_p4 = pnand %p1081_p3, %p1078_p2 }
  0x2a   :  { %1086 = shalt.err (!%p1083_p4)
}
  0x2b   :  { %s1087_s24 = scalar_lea.vmem %s42_s6, 4096  ;;  %p1092_p6 = scmp.lt.s32.totalorder %s42_s6, %s42_s6 }
  0x2c   :  { %p1088_p5 = scmp.ne.s32.totalorder %s42_s6, %s1087_s24  ;;  %p1093_p7 = scmp.lt.s32.totalorder %s1087_s24, %s1087_s24 }
  0x2e   :  { %p1094_p8 = por %p1093_p7, %p1092_p6 }
  0x30   :  { %p1095_p9 = pnand %p1094_p8, %p1088_p5 }
  0x32   :  { %1098 = shalt.err (!%p1095_p9)
}
  0x33   :  { %47 = dma.hbm_to_vmem [thread:$0]  %s1353_s3, 4096, %s42_s6, [#allocation6], %s1128_s25, %s1128_s25, %s1129_s26  }
  0x34   :  { %1121 = dma.done.wait [#allocation3], 16  }
  0x35   :  { %1122 = vsyncadd [#allocation3], 4294967280 }
  0x36   :  { %1123 = dma.done.wait [#allocation6], 5120  }
  0x37   :  { %1124 = vsyncadd [#allocation6], 4294962176  ;;  %v1025_v0 = vld [vmem:[#allocation5] sm:$0xff]   ;;  %v1026_v1 = vld [vmem:[#allocation5 + $0x8] sm:$0xff]  }
  0x38   :  { %971 = vmatprep.subr.bf16.mxu0 %v1025_v0  ;;  %1003 = vmatprep.subr.bf16.mxu1 %v1025_v0  ;;  %v1027_v2 = vld [vmem:[#allocation5 + $0x10] sm:$0xff]   ;;  %v1028_v3 = vld [vmem:[#allocation5 + $0x18] sm:$0xff]   ;;  %v753_v5 = vld [vmem:[#allocation7] sm:$0xff]  }
  0x39   :  { %972 = vmatpush3.bf16.msra.mxu0 %v1025_v0  ;;  %1011 = vmatpush3.bf16.msra.mxu1 %v1025_v0  ;;  %v1200_v4 = vld [vmem:[#allocation2] ss:$0 sm:$0xff]  ;;  %v754_v6 = vunpack.c.l.bf16 %v753_v5  ;;  %v755_v7 = vunpack.c.h.bf16 %v753_v5  ;;  %v785_v8 = vld [vmem:[#allocation7 + $0x40] sm:$0xff]   ;;  %v1030_v39 = vld [vmem:[#allocation5 + $0x28] sm:$0xff]  }
  0x3a   :  { %973 = vmatprep.subr.bf16.mxu0 %v1026_v1  ;;  %1004 = vmatprep.subr.bf16.mxu1 %v1026_v1  ;;  %v817_v9 = vld [vmem:[#allocation7 + $0x80] sm:$0xff]   ;;  %v1205_v11 = vld [vmem:[%s1351_s1] ss:$0 sm:$0xff]  ;;  %v786_v12 = vunpack.c.l.bf16 %v785_v8  ;;  %v787_v13 = vunpack.c.h.bf16 %v785_v8  ;;  %v1031_v57 = vld [vmem:[#allocation5 + $0x30] sm:$0xff]   ;;  %s1132_s1 = smov [#allocation8]  }
  0x3b   :  { %v849_v10 = vld [vmem:[#allocation7 + $0xc0] sm:$0xff]   ;;  %v818_v14 = vunpack.c.l.bf16 %v817_v9  ;;  %v819_v15 = vunpack.c.h.bf16 %v817_v9  ;;  %v98_v17 = vmul.f32 %v754_v6, %v1200_v4  ;;  %v99_v18 = vmul.f32 %v755_v7, %v1200_v4  ;;  %v920_v8 = vld [vmem:[#allocation7 + $0x8] sm:$0xff]   ;;  %s697_s29 = sshll.u32 %s1132_s1, 4  ;;  %s698_s29 = int_to_ptr.vmem [resolvable:$true] %s697_s29 }
  0x3c   :  { %v923_v16 = vld [vmem:[#allocation7 + $0x20] sm:$0xff]   ;;  %v850_v19 = vunpack.c.l.bf16 %v849_v10  ;;  %v851_v20 = vunpack.c.h.bf16 %v849_v10  ;;  %v185_v22 = vmul.f32 %v786_v12, %v1200_v4  ;;  %v186_v23 = vmul.f32 %v787_v13, %v1200_v4  ;;  %s1099_s30 = scalar_lea.vmem %s698_s29, 1024  ;;  %p1104_p11 = scmp.lt.s32.totalorder %s698_s29, %s698_s29 }
  0x3d   :  { %974 = vmatpush3.bf16.msra.mxu0 %v1026_v1  ;;  %1012 = vmatpush3.bf16.msra.mxu1 %v1026_v1  ;;  %v1029_v21 = vld [vmem:[#allocation5 + $0x20] sm:$0xff]   ;;  %v282_v24 = vmul.f32 %v818_v14, %v1200_v4  ;;  %v770_v25 = vunpack.c.l.bf16 %v923_v16  ;;  %v120_v26 = vadd.f32 %v1205_v11, %v98_v17  ;;  %v121_v27 = vadd.f32 %v1205_v11, %v99_v18  ;;  %v1032_v14 = vld [vmem:[#allocation5 + $0x38] sm:$0xff]   ;;  %p1100_p10 = scmp.ne.s32.totalorder %s698_s29, %s1099_s30  ;;  %p1105_p12 = scmp.lt.s32.totalorder %s1099_s30, %s1099_s30 }
  0x3e   :  { %975 = vmatprep.subr.bf16.mxu0 %v1027_v2  ;;  %1005 = vmatprep.subr.bf16.mxu1 %v1027_v2  ;;  %v283_v28 = vmul.f32 %v819_v15, %v1200_v4  ;;  %v379_v29 = vmul.f32 %v850_v19, %v1200_v4  ;;  %v201_v30 = vadd.f32 %v1205_v11, %v185_v22  ;;  %v930_v38 = vld [vmem:[#allocation7 + $0x60] sm:$0xff]   ;;  %v771_v47 = vunpack.c.h.bf16 %v923_v16  ;;  %v927_v19 = vld [vmem:[#allocation7 + $0x48] sm:$0xff]  }
  0x3f   :  { %v202_v31 = vadd.f32 %v1205_v11, %v186_v23  ;;  %v298_v32 = vadd.f32 %v1205_v11, %v282_v24  ;;  %v380_v33 = vmul.f32 %v851_v20, %v1200_v4  ;;  %v136_v34 = vmax.f32 %v120_v26, 0.0  ;;  %v937_v44 = vld [vmem:[#allocation7 + $0xa0] sm:$0xff]   ;;  %p1106_p13 = por %p1105_p12, %p1104_p11 }
  0x40   :  { %v137_v35 = vmax.f32 %v121_v27, 0.0  ;;  %v299_v36 = vadd.f32 %v1205_v11, %v283_v28  ;;  %v395_v37 = vadd.f32 %v1205_v11, %v379_v29  ;;  %v217_v40 = vmax.f32 %v201_v30, 0.0  ;;  %v944_v62 = vld [vmem:[#allocation7 + $0xe0] sm:$0xff]  }
  0x41   :  { %976 = vmatpush3.bf16.msra.mxu0 %v1027_v2  ;;  %1013 = vmatpush3.bf16.msra.mxu1 %v1027_v2  ;;  %v218_v41 = vmax.f32 %v202_v31, 0.0  ;;  %v314_v42 = vmax.f32 %v298_v32, 0.0  ;;  %v396_v43 = vadd.f32 %v1205_v11, %v380_v33  ;;  %v106_v48 = vmul.f32 %v770_v25, %v1200_v4  ;;  %v934_v32 = vld [vmem:[#allocation7 + $0x88] sm:$0xff]   ;;  %p1107_p0 = pnand %p1106_p13, %p1100_p10 }
  0x42   :  { %977 = vmatprep.subr.bf16.mxu0 %v1028_v3  ;;  %1006 = vmatprep.subr.bf16.mxu1 %v1028_v3  ;;  %v315_v45 = vmax.f32 %v299_v36, 0.0  ;;  %v411_v46 = vmax.f32 %v395_v37, 0.0  ;;  %v233_v49 = vadd.f32 %v217_v40, %v136_v34  ;;  %v802_v52 = vunpack.c.l.bf16 %v930_v38 }
  0x43   :  { %v234_v50 = vadd.f32 %v218_v41, %v137_v35  ;;  %v412_v51 = vmax.f32 %v396_v43, 0.0  ;;  %v107_v53 = vmul.f32 %v771_v47, %v1200_v4  ;;  %v128_v54 = vadd.f32 %v1205_v11, %v106_v48 }
  0x44   :  { %v803_v55 = vunpack.c.h.bf16 %v930_v38  ;;  %v834_v56 = vunpack.c.l.bf16 %v937_v44  ;;  %v330_v58 = vadd.f32 %v314_v42, %v233_v49  ;;  %v193_v60 = vmul.f32 %v802_v52, %v1200_v4 }
  0x45   :  { %978 = vmatpush3.bf16.msra.mxu0 %v1028_v3  ;;  %1014 = vmatpush3.bf16.msra.mxu1 %v1028_v3  ;;  %v331_v59 = vadd.f32 %v315_v45, %v234_v50  ;;  %v835_v61 = vunpack.c.h.bf16 %v937_v44  ;;  %v129_v63 = vadd.f32 %v1205_v11, %v107_v53  ;;  %v144_v0 = vmax.f32 %v128_v54, 0.0  ;;  %v941_v45 = vld [vmem:[#allocation7 + $0xc8] sm:$0xff]  }
  0x46   :  { %979 = vmatprep.subr.bf16.mxu0 %v1029_v21  ;;  %1007 = vmatprep.subr.bf16.mxu1 %v1029_v21  ;;  %v194_v1 = vmul.f32 %v803_v55, %v1200_v4  ;;  %v290_v2 = vmul.f32 %v834_v56, %v1200_v4  ;;  %v427_v3 = vadd.f32 %v411_v46, %v330_v58  ;;  %v866_v13 = vunpack.c.l.bf16 %v944_v62  ;;  %v924_v50 = vld [vmem:[#allocation7 + $0x28] sm:$0xff]  }
  0x47   :  { %v428_v5 = vadd.f32 %v412_v51, %v331_v59  ;;  %v209_v6 = vadd.f32 %v1205_v11, %v193_v60  ;;  %v291_v7 = vmul.f32 %v835_v61, %v1200_v4  ;;  %v145_v9 = vmax.f32 %v129_v63, 0.0  ;;  %v931_v63 = vld [vmem:[#allocation7 + $0x68] sm:$0xff]  }
  0x48   :  { %v210_v10 = vadd.f32 %v1205_v11, %v194_v1  ;;  %v306_v12 = vadd.f32 %v1205_v11, %v290_v2  ;;  %v867_v18 = vunpack.c.h.bf16 %v944_v62  ;;  %v387_v22 = vmul.f32 %v866_v13, %v1200_v4 }
  0x49   :  { %980 = vmatpush3.bf16.msra.mxu0 %v1029_v21  ;;  %1015 = vmatpush3.bf16.msra.mxu1 %v1029_v21  ;;  %v443_v15 = vpack.c.bf16 %v428_v5, %v427_v3  ;;  %v225_v16 = vmax.f32 %v209_v6, 0.0  ;;  %v307_v17 = vadd.f32 %v1205_v11, %v291_v7  ;;  %v758_v23 = vunpack.c.l.bf16 %v920_v8 }
  0x4a   :  { %981 = vmatprep.subr.bf16.mxu0 %v1030_v39  ;;  %1008 = vmatprep.subr.bf16.mxu1 %v1030_v39  ;;  %v226_v20 = vmax.f32 %v210_v10, 0.0  ;;  %v322_v21 = vmax.f32 %v306_v12, 0.0  ;;  %v388_v26 = vmul.f32 %v867_v18, %v1200_v4  ;;  %v759_v27 = vunpack.c.h.bf16 %v920_v8 }
  0x4b   :  { %987 = vmatprep.mubr.bf16.mxu0 %v443_v15  ;;  %v241_v24 = vadd.f32 %v225_v16, %v144_v0  ;;  %v323_v25 = vmax.f32 %v307_v17, 0.0  ;;  %v403_v29 = vadd.f32 %v1205_v11, %v387_v22  ;;  %v100_v30 = vmul.f32 %v758_v23, %v1200_v4  ;;  %v945_v23 = vld [vmem:[#allocation7 + $0xe8] sm:$0xff]  }
  0x4c   :  { %v242_v28 = vadd.f32 %v226_v20, %v145_v9  ;;  %v790_v31 = vunpack.c.l.bf16 %v927_v19  ;;  %v404_v34 = vadd.f32 %v1205_v11, %v388_v26  ;;  %v101_v35 = vmul.f32 %v759_v27, %v1200_v4 }
  0x4d   :  { %982 = vmatpush3.bf16.msra.mxu0 %v1030_v39  ;;  %1016 = vmatpush3.bf16.msra.mxu1 %v1030_v39  ;;  %v338_v33 = vadd.f32 %v322_v21, %v241_v24  ;;  %v791_v36 = vunpack.c.h.bf16 %v927_v19  ;;  %v419_v38 = vmax.f32 %v403_v29, 0.0  ;;  %v122_v39 = vadd.f32 %v1205_v11, %v100_v30 }
  0x4e   :  { %983 = vmatprep.subr.bf16.mxu0 %v1031_v57  ;;  %1009 = vmatprep.subr.bf16.mxu1 %v1031_v57  ;;  %v339_v37 = vadd.f32 %v323_v25, %v242_v28  ;;  %v187_v40 = vmul.f32 %v790_v31, %v1200_v4  ;;  %v420_v41 = vmax.f32 %v404_v34, 0.0  ;;  %v123_v42 = vadd.f32 %v1205_v11, %v101_v35 }
  0x4f   :  { %v188_v43 = vmul.f32 %v791_v36, %v1200_v4  ;;  %v822_v44 = vunpack.c.l.bf16 %v934_v32  ;;  %v435_v46 = vadd.f32 %v419_v38, %v338_v33  ;;  %v138_v47 = vmax.f32 %v122_v39, 0.0 }
  0x50   :  { %v203_v48 = vadd.f32 %v1205_v11, %v187_v40  ;;  %v823_v49 = vunpack.c.h.bf16 %v934_v32  ;;  %v436_v51 = vadd.f32 %v420_v41, %v339_v37  ;;  %v139_v52 = vmax.f32 %v123_v42, 0.0  ;;  %v921_v32 = vld [vmem:[#allocation7 + $0x10] sm:$0xff]  }
  0x51   :  { %984 = vmatpush3.bf16.msra.mxu0 %v1031_v57  ;;  %1017 = vmatpush3.bf16.msra.mxu1 %v1031_v57  ;;  %v204_v53 = vadd.f32 %v1205_v11, %v188_v43  ;;  %v284_v54 = vmul.f32 %v822_v44, %v1200_v4  ;;  %v854_v57 = vunpack.c.l.bf16 %v941_v45  ;;  %v855_v58 = vunpack.c.h.bf16 %v941_v45  ;;  %v928_v45 = vld [vmem:[#allocation7 + $0x50] sm:$0xff]  }
  0x52   :  { %985 = vmatprep.subr.bf16.mxu0 %v1032_v14  ;;  %1010 = vmatprep.subr.bf16.mxu1 %v1032_v14  ;;  %v219_v55 = vmax.f32 %v203_v48, 0.0  ;;  %v285_v56 = vmul.f32 %v823_v49, %v1200_v4  ;;  %v447_v59 = vpack.c.bf16 %v436_v51, %v435_v46  ;;  %v774_v62 = vunpack.c.l.bf16 %v924_v50 }
  0x53   :  { %v220_v60 = vmax.f32 %v204_v53, 0.0  ;;  %v300_v61 = vadd.f32 %v1205_v11, %v284_v54  ;;  %v381_v2 = vmul.f32 %v854_v57, %v1200_v4  ;;  %v382_v3 = vmul.f32 %v855_v58, %v1200_v4  ;;  %v935_v58 = vld [vmem:[#allocation7 + $0x90] sm:$0xff]  }
  0x54   :  { %v235_v0 = vadd.f32 %v219_v55, %v138_v47  ;;  %v301_v1 = vadd.f32 %v1205_v11, %v285_v56  ;;  %995 = vmatprep.mubr.bf16.mxu1 %v447_v59  ;;  %v775_v7 = vunpack.c.h.bf16 %v924_v50  ;;  %v108_v8 = vmul.f32 %v774_v62, %v1200_v4 }
  0x55   :  { %986 = vmatpush3.bf16.msra.mxu0 %v1032_v14  ;;  %1018 = vmatpush3.bf16.msra.mxu1 %v1032_v14  ;;  %v236_v5 = vadd.f32 %v220_v60, %v139_v52  ;;  %v316_v6 = vmax.f32 %v300_v61, 0.0  ;;  %v397_v10 = vadd.f32 %v1205_v11, %v381_v2  ;;  %v398_v12 = vadd.f32 %v1205_v11, %v382_v3  ;;  %v938_v14 = vld [vmem:[#allocation7 + $0xa8] sm:$0xff]   ;;  %v942_v3 = vld [vmem:[#allocation7 + $0xd0] sm:$0xff]  }
  0x56   :  { %v317_v9 = vmax.f32 %v301_v1, 0.0  ;;  %v806_v13 = vunpack.c.l.bf16 %v931_v63  ;;  %v109_v16 = vmul.f32 %v775_v7, %v1200_v4  ;;  %v130_v17 = vadd.f32 %v1205_v11, %v108_v8 }
  0x57   :  { %v332_v15 = vadd.f32 %v316_v6, %v235_v0  ;;  %v807_v18 = vunpack.c.h.bf16 %v931_v63  ;;  %v413_v20 = vmax.f32 %v397_v10, 0.0  ;;  %v414_v21 = vmax.f32 %v398_v12, 0.0 }
  0x58   :  { %v333_v19 = vadd.f32 %v317_v9, %v236_v5  ;;  %v195_v22 = vmul.f32 %v806_v13, %v1200_v4  ;;  %v131_v24 = vadd.f32 %v1205_v11, %v109_v16  ;;  %v146_v25 = vmax.f32 %v130_v17, 0.0  ;;  %v925_v9 = vld [vmem:[#allocation7 + $0x30] sm:$0xff]  }
  0x59   :  { %v196_v26 = vmul.f32 %v807_v18, %v1200_v4  ;;  %v838_v27 = vunpack.c.l.bf16 %v938_v14  ;;  %v429_v28 = vadd.f32 %v413_v20, %v332_v15  ;;  %v839_v31 = vunpack.c.h.bf16 %v938_v14 }
  0x5a   :  { %v430_v29 = vadd.f32 %v414_v21, %v333_v19  ;;  %v211_v30 = vadd.f32 %v1205_v11, %v195_v22  ;;  %v147_v33 = vmax.f32 %v131_v24, 0.0  ;;  %v870_v36 = vunpack.c.l.bf16 %v945_v23 }
  0x5b   :  { %v212_v34 = vadd.f32 %v1205_v11, %v196_v26  ;;  %v292_v35 = vmul.f32 %v838_v27, %v1200_v4  ;;  %v293_v39 = vmul.f32 %v839_v31, %v1200_v4  ;;  %v871_v40 = vunpack.c.h.bf16 %v945_v23  ;;  %v932_v27 = vld [vmem:[#allocation7 + $0x70] sm:$0xff]  }
  0x5c   :  { %v444_v37 = vpack.c.bf16 %v430_v29, %v429_v28  ;;  %v227_v38 = vmax.f32 %v211_v30, 0.0  ;;  %v389_v43 = vmul.f32 %v870_v36, %v1200_v4  ;;  %v762_v44 = vunpack.c.l.bf16 %v921_v32 }
  0x5d   :  { %v228_v41 = vmax.f32 %v212_v34, 0.0  ;;  %v308_v42 = vadd.f32 %v1205_v11, %v292_v35  ;;  %v309_v47 = vadd.f32 %v1205_v11, %v293_v39  ;;  %v390_v48 = vmul.f32 %v871_v40, %v1200_v4  ;;  %v939_v40 = vld [vmem:[#allocation7 + $0xb0] sm:$0xff]  }
  0x5e   :  { %988 = vmatmul.mubr.bf16.vlgmr.msra.gmra.mrb[0].mxu0 %v444_v37  ;;  %v243_v46 = vadd.f32 %v227_v38, %v146_v25  ;;  %v763_v49 = vunpack.c.h.bf16 %v921_v32  ;;  %v405_v52 = vadd.f32 %v1205_v11, %v389_v43  ;;  %v102_v53 = vmul.f32 %v762_v44, %v1200_v4 }
  0x5f   :  { %v244_v50 = vadd.f32 %v228_v41, %v147_v33  ;;  %v324_v51 = vmax.f32 %v308_v42, 0.0  ;;  %v325_v54 = vmax.f32 %v309_v47, 0.0  ;;  %v406_v55 = vadd.f32 %v1205_v11, %v390_v48 }
  0x60   :  { %v103_v56 = vmul.f32 %v763_v49, %v1200_v4  ;;  %v794_v57 = vunpack.c.l.bf16 %v928_v45  ;;  %v421_v60 = vmax.f32 %v405_v52, 0.0  ;;  %v124_v61 = vadd.f32 %v1205_v11, %v102_v53 }
  0x61   :  { %v340_v59 = vadd.f32 %v324_v51, %v243_v46  ;;  %v795_v62 = vunpack.c.h.bf16 %v928_v45  ;;  %v341_v63 = vadd.f32 %v325_v54, %v244_v50  ;;  %v422_v0 = vmax.f32 %v406_v55, 0.0  ;;  %v946_v45 = vld [vmem:[#allocation7 + $0xf0] sm:$0xff]   ;;  %v922_v54 = vld [vmem:[#allocation7 + $0x18] sm:$0xff]  }
  0x62   :  { %v125_v1 = vadd.f32 %v1205_v11, %v103_v56  ;;  %v189_v2 = vmul.f32 %v794_v57, %v1200_v4  ;;  %v140_v6 = vmax.f32 %v124_v61, 0.0  ;;  %v826_v8 = vunpack.c.l.bf16 %v935_v58 }
  0x63   :  { %v437_v5 = vadd.f32 %v421_v60, %v340_v59  ;;  %v190_v7 = vmul.f32 %v795_v62, %v1200_v4  ;;  %v438_v10 = vadd.f32 %v422_v0, %v341_v63  ;;  %v827_v14 = vunpack.c.h.bf16 %v935_v58 }
  0x64   :  { %v141_v12 = vmax.f32 %v125_v1, 0.0  ;;  %v205_v13 = vadd.f32 %v1205_v11, %v189_v2  ;;  %v286_v16 = vmul.f32 %v826_v8, %v1200_v4  ;;  %v858_v17 = vunpack.c.l.bf16 %v942_v3  ;;  %v929_v8 = vld [vmem:[#allocation7 + $0x58] sm:$0xff]  }
  0x65   :  { %v206_v15 = vadd.f32 %v1205_v11, %v190_v7  ;;  %v859_v18 = vunpack.c.h.bf16 %v942_v3  ;;  %v448_v19 = vpack.c.bf16 %v438_v10, %v437_v5  ;;  %v287_v21 = vmul.f32 %v827_v14, %v1200_v4 }
  0x66   :  { %v221_v20 = vmax.f32 %v205_v13, 0.0  ;;  %v778_v22 = vunpack.c.l.bf16 %v925_v9  ;;  %v302_v24 = vadd.f32 %v1205_v11, %v286_v16  ;;  %v383_v25 = vmul.f32 %v858_v17, %v1200_v4 }
  0x67   :  { %v222_v23 = vmax.f32 %v206_v15, 0.0  ;;  %v384_v26 = vmul.f32 %v859_v18, %v1200_v4  ;;  %996 = vmatmul.mubr.bf16.vlgmr.msra.gmra.mrb[0].mxu1 %v448_v19  ;;  %v303_v29 = vadd.f32 %v1205_v11, %v287_v21  ;;  %v779_v30 = vunpack.c.h.bf16 %v925_v9  ;;  %v936_v18 = vld [vmem:[#allocation7 + $0x98] sm:$0xff]  }
  0x68   :  { %v237_v28 = vadd.f32 %v221_v20, %v140_v6  ;;  %v110_v31 = vmul.f32 %v778_v22, %v1200_v4  ;;  %v318_v33 = vmax.f32 %v302_v24, 0.0  ;;  %v399_v34 = vadd.f32 %v1205_v11, %v383_v25 }
  0x69   :  { %v238_v32 = vadd.f32 %v222_v23, %v141_v12  ;;  %v400_v35 = vadd.f32 %v1205_v11, %v384_v26  ;;  %v319_v36 = vmax.f32 %v303_v29, 0.0  ;;  %v111_v37 = vmul.f32 %v779_v30, %v1200_v4 }
  0x6a   :  { %v132_v38 = vadd.f32 %v1205_v11, %v110_v31  ;;  %v810_v39 = vunpack.c.l.bf16 %v932_v27  ;;  %v334_v41 = vadd.f32 %v318_v33, %v237_v28  ;;  %v415_v42 = vmax.f32 %v399_v34, 0.0 }
  0x6b   :  { %v416_v43 = vmax.f32 %v400_v35, 0.0  ;;  %v811_v44 = vunpack.c.h.bf16 %v932_v27  ;;  %v335_v46 = vadd.f32 %v319_v36, %v238_v32  ;;  %v133_v47 = vadd.f32 %v1205_v11, %v111_v37  ;;  %v943_v27 = vld [vmem:[#allocation7 + $0xd8] sm:$0xff]  }
  0x6c   :  { %v148_v48 = vmax.f32 %v132_v38, 0.0  ;;  %v197_v49 = vmul.f32 %v810_v39, %v1200_v4  ;;  %v431_v50 = vadd.f32 %v415_v42, %v334_v41  ;;  %v842_v52 = vunpack.c.l.bf16 %v939_v40  ;;  %v926_v36 = vld [vmem:[#allocation7 + $0x38] sm:$0xff]  }
  0x6d   :  { %v198_v51 = vmul.f32 %v811_v44, %v1200_v4  ;;  %v843_v53 = vunpack.c.h.bf16 %v939_v40  ;;  %v432_v55 = vadd.f32 %v416_v43, %v335_v46  ;;  %v149_v56 = vmax.f32 %v133_v47, 0.0 }
  0x6e   :  { %v213_v57 = vadd.f32 %v1205_v11, %v197_v49  ;;  %v874_v58 = vunpack.c.l.bf16 %v946_v45  ;;  %v294_v60 = vmul.f32 %v842_v52, %v1200_v4  ;;  %v875_v62 = vunpack.c.h.bf16 %v946_v45 }
  0x6f   :  { %v214_v59 = vadd.f32 %v1205_v11, %v198_v51  ;;  %v295_v61 = vmul.f32 %v843_v53, %v1200_v4  ;;  %v445_v63 = vpack.c.bf16 %v432_v55, %v431_v50  ;;  %v766_v2 = vunpack.c.l.bf16 %v922_v54  ;;  %v933_v53 = vld [vmem:[#allocation7 + $0x78] sm:$0xff]  }
  0x70   :  { %v229_v0 = vmax.f32 %v213_v57, 0.0  ;;  %v391_v1 = vmul.f32 %v874_v58, %v1200_v4  ;;  %v310_v5 = vadd.f32 %v1205_v11, %v294_v60  ;;  %v392_v7 = vmul.f32 %v875_v62, %v1200_v4  ;;  %v940_v62 = vld [vmem:[#allocation7 + $0xb8] sm:$0xff]  }
  0x71   :  { %v230_v3 = vmax.f32 %v214_v59, 0.0  ;;  %v311_v6 = vadd.f32 %v1205_v11, %v295_v61  ;;  %991 = vmatprep.mubr.bf16.mxu0 %v445_v63  ;;  %v767_v12 = vunpack.c.h.bf16 %v922_v54  ;;  %v104_v13 = vmul.f32 %v766_v2, %v1200_v4 }
  0x72   :  { %v245_v9 = vadd.f32 %v229_v0, %v148_v48  ;;  %v407_v10 = vadd.f32 %v1205_v11, %v391_v1  ;;  %v326_v15 = vmax.f32 %v310_v5, 0.0  ;;  %v408_v17 = vadd.f32 %v1205_v11, %v392_v7 }
  0x73   :  { %v246_v14 = vadd.f32 %v230_v3, %v149_v56  ;;  %v327_v16 = vmax.f32 %v311_v6, 0.0  ;;  %v105_v20 = vmul.f32 %v767_v12, %v1200_v4  ;;  %v126_v21 = vadd.f32 %v1205_v11, %v104_v13 }
  0x74   :  { %v423_v19 = vmax.f32 %v407_v10, 0.0  ;;  %v798_v22 = vunpack.c.l.bf16 %v929_v8  ;;  %v342_v23 = vadd.f32 %v326_v15, %v245_v9  ;;  %v424_v25 = vmax.f32 %v408_v17, 0.0 }
  0x75   :  { %v343_v24 = vadd.f32 %v327_v16, %v246_v14  ;;  %v799_v26 = vunpack.c.h.bf16 %v929_v8  ;;  %v127_v28 = vadd.f32 %v1205_v11, %v105_v20  ;;  %v142_v29 = vmax.f32 %v126_v21, 0.0  ;;  %v947_v8 = vld [vmem:[#allocation7 + $0xf8] sm:$0xff]  }
  0x76   :  { %v191_v30 = vmul.f32 %v798_v22, %v1200_v4  ;;  %v830_v31 = vunpack.c.l.bf16 %v936_v18  ;;  %v439_v32 = vadd.f32 %v423_v19, %v342_v23  ;;  %v831_v35 = vunpack.c.h.bf16 %v936_v18 }
  0x77   :  { %v440_v33 = vadd.f32 %v424_v25, %v343_v24  ;;  %v192_v34 = vmul.f32 %v799_v26, %v1200_v4  ;;  %v143_v37 = vmax.f32 %v127_v28, 0.0  ;;  %v862_v40 = vunpack.c.l.bf16 %v943_v27 }
  0x78   :  { %v207_v38 = vadd.f32 %v1205_v11, %v191_v30  ;;  %v288_v39 = vmul.f32 %v830_v31, %v1200_v4  ;;  %v289_v43 = vmul.f32 %v831_v35, %v1200_v4  ;;  %v863_v44 = vunpack.c.h.bf16 %v943_v27 }
  0x79   :  { %v449_v41 = vpack.c.bf16 %v440_v33, %v439_v32  ;;  %v208_v42 = vadd.f32 %v1205_v11, %v192_v34  ;;  %v385_v47 = vmul.f32 %v862_v40, %v1200_v4  ;;  %v782_v48 = vunpack.c.l.bf16 %v926_v36 }
  0x7a   :  { %v223_v45 = vmax.f32 %v207_v38, 0.0  ;;  %v304_v46 = vadd.f32 %v1205_v11, %v288_v39  ;;  %v305_v50 = vadd.f32 %v1205_v11, %v289_v43  ;;  %v386_v51 = vmul.f32 %v863_v44, %v1200_v4 }
  0x7b   :  { %999 = vmatprep.mubr.bf16.mxu1 %v449_v41  ;;  %v224_v49 = vmax.f32 %v208_v42, 0.0  ;;  %v783_v52 = vunpack.c.h.bf16 %v926_v36  ;;  %v401_v56 = vadd.f32 %v1205_v11, %v385_v47  ;;  %v112_v57 = vmul.f32 %v782_v48, %v1200_v4 }
  0x7c   :  { %v239_v54 = vadd.f32 %v223_v45, %v142_v29  ;;  %v320_v55 = vmax.f32 %v304_v46, 0.0  ;;  %v321_v59 = vmax.f32 %v305_v50, 0.0  ;;  %v402_v60 = vadd.f32 %v1205_v11, %v386_v51 }
  0x7d   :  { %v240_v58 = vadd.f32 %v224_v49, %v143_v37  ;;  %v113_v61 = vmul.f32 %v783_v52, %v1200_v4  ;;  %v417_v0 = vmax.f32 %v401_v56, 0.0  ;;  %v134_v1 = vadd.f32 %v1205_v11, %v112_v57 }
  0x7e   :  { %v336_v63 = vadd.f32 %v320_v55, %v239_v54  ;;  %v814_v2 = vunpack.c.l.bf16 %v933_v53  ;;  %v418_v5 = vmax.f32 %v402_v60, 0.0  ;;  %v815_v7 = vunpack.c.h.bf16 %v933_v53 }
  0x7f   :  { %v337_v3 = vadd.f32 %v321_v59, %v240_v58  ;;  %v135_v6 = vadd.f32 %v1205_v11, %v113_v61  ;;  %v846_v12 = vunpack.c.l.bf16 %v940_v62  ;;  %v150_v14 = vmax.f32 %v134_v1, 0.0 }
  0x80   :  { %v433_v9 = vadd.f32 %v417_v0, %v336_v63  ;;  %v199_v10 = vmul.f32 %v814_v2, %v1200_v4  ;;  %v200_v15 = vmul.f32 %v815_v7, %v1200_v4  ;;  %v847_v16 = vunpack.c.h.bf16 %v940_v62 }
  0x81   :  { %v434_v13 = vadd.f32 %v418_v5, %v337_v3  ;;  %v296_v18 = vmul.f32 %v846_v12, %v1200_v4  ;;  %v878_v19 = vunpack.c.l.bf16 %v947_v8  ;;  %v879_v20 = vunpack.c.h.bf16 %v947_v8 }
  0x82   :  { %v215_v17 = vadd.f32 %v1205_v11, %v199_v10  ;;  %v151_v22 = vmax.f32 %v135_v6, 0.0  ;;  %v216_v23 = vadd.f32 %v1205_v11, %v200_v15  ;;  %v297_v24 = vmul.f32 %v847_v16, %v1200_v4 }
  0x83   :  { %v446_v21 = vpack.c.bf16 %v434_v13, %v433_v9  ;;  %v312_v26 = vadd.f32 %v1205_v11, %v296_v18  ;;  %v393_v27 = vmul.f32 %v878_v19, %v1200_v4  ;;  %v394_v28 = vmul.f32 %v879_v20, %v1200_v4 }
  0x84   :  { %v231_v25 = vmax.f32 %v215_v17, 0.0  ;;  %v232_v29 = vmax.f32 %v216_v23, 0.0  ;;  %v313_v30 = vadd.f32 %v1205_v11, %v297_v24 }
  0x85   :  { %992 = vmatmul.mubr.bf16.gmra.mrb[4].mxu0 %v446_v21  ;;  %v328_v32 = vmax.f32 %v312_v26, 0.0  ;;  %v409_v33 = vadd.f32 %v1205_v11, %v393_v27  ;;  %v410_v34 = vadd.f32 %v1205_v11, %v394_v28 }
  0x86   :  { %v247_v31 = vadd.f32 %v231_v25, %v150_v14  ;;  %v248_v35 = vadd.f32 %v232_v29, %v151_v22  ;;  %v329_v36 = vmax.f32 %v313_v30, 0.0 }
  0x87   :  { %v425_v38 = vmax.f32 %v409_v33, 0.0  ;;  %v426_v39 = vmax.f32 %v410_v34, 0.0 }
  0x88   :  { %v344_v37 = vadd.f32 %v328_v32, %v247_v31  ;;  %v345_v40 = vadd.f32 %v329_v36, %v248_v35 }
  0x8a   :  { %v441_v41 = vadd.f32 %v425_v38, %v344_v37  ;;  %v442_v42 = vadd.f32 %v426_v39, %v345_v40 }
  0x8c   :  { %v450_v43 = vpack.c.bf16 %v442_v42, %v441_v41 }
  0x8e   :  { %1000 = vmatmul.mubr.bf16.gmra.mrb[4].mxu1 %v450_v43 }
 0x131   :  { %v989_v4 = vpop.f32.mrb[0].mxu0 }
 0x132   :  { %v549_v44 = vpop.f32.mrb[1].mxu0 }
 0x133   :  { %v990_v45 = vpop.f32.mrb[2].mxu0 }
 0x134   :  { %v888_v46 = vpack.c.bf16 %v990_v45, %v989_v4  ;;  %v552_v47 = vpop.f32.mrb[3].mxu0 }
 0x135   :  { %v883_v48 = vpack.c.bf16 %v552_v47, %v549_v44 }
 0x136   :  { %948 = vst [vmem:[#allocation8 + $0x8] sm:$0xff] %v888_v46  }
 0x137   :  { %884 = vst [vmem:[#allocation8] sm:$0xff] %v883_v48  }
 0x13a   :  { %v997_v49 = vpop.f32.mrb[0].mxu1 }
 0x13b   :  { %v581_v11 = vpop.f32.mrb[1].mxu1 }
 0x13c   :  { %v998_v50 = vpop.f32.mrb[2].mxu1 }
 0x13d   :  { %v908_v51 = vpack.c.bf16 %v998_v50, %v997_v49  ;;  %v584_v52 = vpop.f32.mrb[3].mxu1 }
 0x13e   :  { %v903_v53 = vpack.c.bf16 %v584_v52, %v581_v11 }
 0x13f   :  { %952 = vst [vmem:[#allocation8 + $0x28] sm:$0xff] %v908_v51  }
 0x140   :  { %951 = vst [vmem:[#allocation8 + $0x20] sm:$0xff] %v903_v53  }
 0x158   :  { %v993_v54 = vpop.f32.mrb[4].mxu0 }
 0x159   :  { %v565_v55 = vpop.f32.mrb[5].mxu0 }
 0x15a   :  { %v994_v56 = vpop.f32.mrb[6].mxu0 }
 0x15b   :  { %v898_v57 = vpack.c.bf16 %v994_v56, %v993_v54  ;;  %v568_v58 = vpop.f32.mrb[7].mxu0 }
 0x15c   :  { %v893_v59 = vpack.c.bf16 %v568_v58, %v565_v55 }
 0x15d   :  { %950 = vst [vmem:[#allocation8 + $0x18] sm:$0xff] %v898_v57  }
 0x15e   :  { %949 = vst [vmem:[#allocation8 + $0x10] sm:$0xff] %v893_v59  }
 0x161   :  { %v1001_v60 = vpop.f32.mrb[4].mxu1 }
 0x162   :  { %v597_v61 = vpop.f32.mrb[5].mxu1 }
 0x163   :  { %v1002_v62 = vpop.f32.mrb[6].mxu1 }
 0x164   :  { %v918_v63 = vpack.c.bf16 %v1002_v62, %v1001_v60  ;;  %v600_v0 = vpop.f32.mrb[7].mxu1 }
 0x165   :  { %v913_v1 = vpack.c.bf16 %v600_v0, %v597_v61 }
 0x166   :  { %954 = vst [vmem:[#allocation8 + $0x38] sm:$0xff] %v918_v63  }
 0x167   :  { %953 = vst [vmem:[#allocation8 + $0x30] sm:$0xff] %v913_v1  }
 0x168   :  { %1110 = shalt.err (!%p1107_p0)
}
 0x169   :  { %s1111_s7 = scalar_lea.hbm %s1354_s4, 1024 }
 0x16a   :  { %p1112_p1 = scmp.ne.s32.totalorder %s1354_s4, %s1111_s7  ;;  %p1115_p2 = scmp.lt.u32.totalorder %s1111_s7, %s1354_s4 }
 0x16c   :  { %p1117_p3 = pnand %p1115_p2, %p1112_p1 }
 0x16e   :  { %1120 = shalt.err (!%p1117_p3)
}
 0x16f   :  { %703 = dma.vmem_to_hbm [thread:$0]  %s698_s29, 1024, %s1354_s4, [#allocation4], %s1128_s25, %s1128_s25, %s1129_s26  }
 0x170   :  { %1125 = dma.done.wait [#allocation4], 1024  }
 0x171   :  { %1126 = vsyncadd [#allocation4], 4294966272 }
 0x172   :  { %707 = vsyncpa [#allocation3], 1 }
 0x173   :  { %708 = vsyncpa [#allocation6], 1 }
 0x174   :  { %709 = vsyncpa [#allocation4], 1 }

</bundles_post_ra>
